<compile_context>
chip_gen: v5e
topology: v5e:2x2
jax: 0.10.0
libtpu: 0.0.40
codegen_flags: <defaults>
</compile_context>

<pallas_src>
import functools

import jax
import jax.numpy as jnp
from jax.experimental import pallas as pl
from jax.experimental.pallas import tpu as pltpu


def _round_up(n, m):
    return ((n + m - 1) // m) * m


def _cdiv(a, b):
    return -(-a // b)


_MAX_TILE = 2048          # rows per grid step (~8 MiB VMEM footprint, fits all gens)
_SPLIT_THRESHOLD = 256    # below this, never split the batch even on multi-TC chips


def _device_kind():
    try:
        return jax.devices()[0].device_kind.lower()
    except Exception:
        return ""


def _num_tensorcores():
    # v7x exposes 2 TensorCores per device; v5e/v6e have 1.
    return 2 if "v7" in _device_kind() else 1


def _bf16_elementwise_ok():
    # v6e / v7x have a bf16 VPU+EUP; v5e and older do not -> keep tanh in f32 there.
    kind = _device_kind()
    return ("v6" in kind) or ("v7" in kind)


def _plan_batch(batch, num_cores):
    """Return (padded_batch, batch_tile, steps)."""
    # Small/medium batch: one full-array block => no padding, no post-slice,
    # and no per-step pipeline overhead.  Splitting only helps on multi-TC chips.
    if batch <= _MAX_TILE and (num_cores <= 1 or batch < _SPLIT_THRESHOLD):
        return batch, batch, 1
    # Otherwise: balanced tiles with a step count that is a multiple of
    # num_cores, so the "parallel" grid axis shards evenly across TensorCores.
    steps = max(num_cores, _cdiv(batch, _MAX_TILE))
    steps = _round_up(steps, num_cores)
    tile = _round_up(_cdiv(batch, steps), 16)
    return steps * tile, tile, steps


def actor_kernel(x_ref, w1_ref, b1_ref, w2_ref, b2_ref, w3_ref, b3_ref, o_ref,
                 *, act_dtype):
    """Fused 3-layer MLP for one batch tile (everything resident in VMEM).

    Matmuls run on the MXU with f32 accumulation; bias-adds are f32; tanh runs
    in `act_dtype` (bf16 on v6e/v7x, f32 on v5e).  The final store is at the
    natural action width (no lane padding of the output).
    """
    w_dtype = w1_ref.dtype
    x = x_ref[...].astype(w_dtype)                       # in-kernel cast (VPU)
    a1 = jnp.dot(x, w1_ref[...], preferred_element_type=jnp.float32) + b1_ref[...]
    h1 = jnp.tanh(a1.astype(act_dtype)).astype(w_dtype)
    a2 = jnp.dot(h1, w2_ref[...], preferred_element_type=jnp.float32) + b2_ref[...]
    h2 = jnp.tanh(a2.astype(act_dtype)).astype(w_dtype)
    o_ref[...] = (
        jnp.dot(h2, w3_ref[...], preferred_element_type=jnp.float32) + b3_ref[...]
    ).astype(o_ref.dtype)
    # TODO(synk): if the narrow-row output DMA ever shows up as a bottleneck,
    # pack 128//action_size rows into one lane-dense 128-wide slab in-kernel
    # (review option (b)) instead of the natural-width store used here.


@functools.partial(jax.jit, static_argnames=("batch_tile", "use_bf16", "bf16_tanh"))
def actor_forward(x, w1, b1, w2, b2, w3, b3, *,
                  batch_tile=None, use_bf16=True, bf16_tanh=None):
    batch, obs_size = x.shape
    hidden = w1.shape[1]
    action_size = w3.shape[1]

    num_cores = _num_tensorcores()
    if batch_tile is None:
        batch_p, batch_tile, steps = _plan_batch(batch, num_cores)
    else:
        batch_tile = int(batch_tile)
        if batch_tile < batch:
            batch_tile = max(8, _round_up(batch_tile, 8))
            steps = _cdiv(batch, batch_tile)
            batch_p = steps * batch_tile
        else:
            batch_tile, steps, batch_p = batch, 1, batch

    if batch_p != batch:
        # Only triggers for non-divisible multi-tile batches.
        # TODO(synk): tail-block masking would avoid this extra pass over x.
        x = jnp.pad(x, ((0, batch_p - batch), (0, 0)))

    # bf16 MXU inputs (f32 accumulation kept inside the kernel).  x is NOT cast
    # here -- it is cast on the VPU inside the kernel, avoiding an extra
    # host-side HBM pass over the activations.
    if use_bf16:
        w1, w2, w3 = (w.astype(jnp.bfloat16) for w in (w1, w2, w3))
    if bf16_tanh is None:
        bf16_tanh = bool(use_bf16) and _bf16_elementwise_ok()
    act_dtype = jnp.bfloat16 if bf16_tanh else jnp.float32

    grid = (steps,)
    in_specs = [
        pl.BlockSpec((batch_tile, obs_size), lambda i: (i, 0)),   # x (tiled)
        # Weights/biases: constant index_map => resident across grid steps,
        # no re-DMA.  (pl.Buffered(1) would also halve their VMEM reservation,
        # but the ~200 KB saved is irrelevant here, so it is left at default.)
        pl.BlockSpec((obs_size, hidden), lambda i: (0, 0)),       # w1
        pl.BlockSpec((1, hidden), lambda i: (0, 0)),              # b1
        pl.BlockSpec((hidden, hidden), lambda i: (0, 0)),         # w2
        pl.BlockSpec((1, hidden), lambda i: (0, 0)),              # b2
        pl.BlockSpec((hidden, action_size), lambda i: (0, 0)),    # w3 (narrow)
        pl.BlockSpec((1, action_size), lambda i: (0, 0)),         # b3 (narrow)
    ]
    out_specs = pl.BlockSpec((batch_tile, action_size), lambda i: (i, 0))

    # --- scheduler hints: cost estimate + explicit VMEM limit ---
    flops = 2 * batch_p * (obs_size * hidden + hidden * hidden + hidden * action_size)
    transcendentals = 2 * batch_p * hidden
    bytes_accessed = (
        sum(int(a.size) * a.dtype.itemsize for a in (x, w1, b1, w2, b2, w3, b3))
        + batch_p * action_size * 4
    )
    cost = pl.CostEstimate(flops=flops, transcendentals=transcendentals,
                           bytes_accessed=bytes_accessed)

    lane = lambda n: _round_up(max(n, 128), 128)   # VMEM lane-pads the last dim
    wt_bytes = sum(int(a.size) * a.dtype.itemsize for a in (w1, b1, w2, b2, w3, b3))
    tile_bytes = (
        2 * batch_tile * lane(obs_size) * x.dtype.itemsize   # x double-buffer
        + 2 * batch_tile * lane(action_size) * 4             # out double-buffer
        + 2 * wt_bytes                                       # resident weights
        + 4 * batch_tile * hidden * 4                        # h1/h2/cast headroom
    )
    vmem_limit = int(min(max(2 * tile_bytes, 16 * 1024 * 1024), 64 * 1024 * 1024))

    out = pl.pallas_call(
        functools.partial(actor_kernel, act_dtype=act_dtype),
        out_shape=jax.ShapeDtypeStruct((batch_p, action_size), jnp.float32),
        grid_spec=pltpu.PrefetchScalarGridSpec(
            num_scalar_prefetch=0,
            grid=grid,
            in_specs=in_specs,
            out_specs=out_specs,
        ),
        compiler_params=pltpu.CompilerParams(
            dimension_semantics=("parallel",),
            vmem_limit_bytes=vmem_limit,
        ),
        cost_estimate=cost,
    )(x, w1, b1, w2, b2, w3, b3)

    # Only row padding (if any) needs stripping; the action dimension is
    # already emitted at its natural width (no column slice, no second pass).
    return out if batch_p == batch else out[:batch]


def init_linear_params(key, in_features, out_features):
    """PyTorch-style nn.Linear init U(-1/sqrt(in), 1/sqrt(in)).

    Returns W as (in_features, out_features) (already transposed for x @ W).
    """
    kw, kb = jax.random.split(key)
    bound = 1.0 / jnp.sqrt(jnp.float32(in_features))
    w = jax.random.uniform(kw, (in_features, out_features), jnp.float32, -bound, bound)
    b = jax.random.uniform(kb, (1, out_features), jnp.float32, -bound, bound)
    return w, b


def reference_forward(x, w1, b1, w2, b2, w3, b3):
    h1 = jnp.tanh(x @ w1 + b1)
    h2 = jnp.tanh(h1 @ w2 + b2)
    return h2 @ w3 + b3


if __name__ == "__main__":
    key = jax.random.PRNGKey(0)
    k_x, k1, k2, k3, k_big = jax.random.split(key, 5)

    batch, obs_size, hidden, action_size = 8, 32, 128, 8

    x = jax.random.normal(k_x, (batch, obs_size), jnp.float32)
    w1, b1 = init_linear_params(k1, obs_size, hidden)
    w2, b2 = init_linear_params(k2, hidden, hidden)
    w3, b3 = init_linear_params(k3, hidden, action_size)
    params = (w1, b1, w2, b2, w3, b3)

    ref = reference_forward(x, *params)

    # 1) exact f32 path (single full-array block, no padding) -- tight tolerance.
    out_f32 = jax.block_until_ready(actor_forward(x, *params, use_bf16=False))
    assert out_f32.shape == (batch, action_size)
    assert jnp.allclose(out_f32, ref, atol=1e-5, rtol=1e-5)

    # 2) default path: bf16 MXU inputs (+ bf16 tanh on v6e/v7x) -- loose tolerance.
    out_bf16 = jax.block_until_ready(actor_forward(x, *params))
    assert out_bf16.shape == (batch, action_size)
    assert jnp.allclose(out_bf16, ref, atol=5e-2, rtol=5e-2)

    # 3) non-divisible batch forced onto a multi-step grid (exercises padding,
    #    multi-tile pipelining and the row-only post-slice) -- f32, tight check.
    big_batch = 300
    xb = jax.random.normal(k_big, (big_batch, obs_size), jnp.float32)
    ref_big = reference_forward(xb, *params)
    out_big = jax.block_until_ready(
        actor_forward(xb, *params, batch_tile=128, use_bf16=False))
    assert out_big.shape == (big_batch, action_size)
    assert jnp.allclose(out_big, ref_big, atol=1e-5, rtol=1e-5)

    # 4) default auto-tiling on the same batch (single block on 1-TC chips,
    #    two balanced tiles on v7x), bf16 path.
    out_big_def = jax.block_until_ready(actor_forward(xb, *params))
    assert out_big_def.shape == (big_batch, action_size)
    assert jnp.allclose(out_big_def, ref_big, atol=5e-2, rtol=5e-2)

    print("KERNEL_OK")
</pallas_src>

<mosaic_0001>
module attributes {stable_mosaic.version = 11 : i64} {
  func.func @actor_kernel(%arg0: i32, %arg1: memref<8x32xf32, #tpu.memory_space<vmem>>, %arg2: memref<32x128xf32, #tpu.memory_space<vmem>>, %arg3: memref<1x128xf32, #tpu.memory_space<vmem>>, %arg4: memref<128x128xf32, #tpu.memory_space<vmem>>, %arg5: memref<1x128xf32, #tpu.memory_space<vmem>>, %arg6: memref<128x8xf32, #tpu.memory_space<vmem>>, %arg7: memref<1x8xf32, #tpu.memory_space<vmem>>, %arg8: memref<8x8xf32, #tpu.memory_space<vmem>>) attributes {dimension_semantics = [#tpu.dimension_semantics<parallel>], iteration_bounds = array<i64: 1>, scalar_prefetch = 0 : i64, scratch_operands = 0 : i64, tpu.core_type = #tpu.core_type<tc>, window_params = [{transform_indices = @transform_0, window_bounds = array<i64: 8, 32>}, {pipeline_mode = #tpu.pipeline_mode<synchronous>, transform_indices = @transform_1, window_bounds = array<i64: 32, 128>}, {pipeline_mode = #tpu.pipeline_mode<synchronous>, transform_indices = @transform_2, window_bounds = array<i64: 1, 128>}, {pipeline_mode = #tpu.pipeline_mode<synchronous>, transform_indices = @transform_3, window_bounds = array<i64: 128, 128>}, {pipeline_mode = #tpu.pipeline_mode<synchronous>, transform_indices = @transform_4, window_bounds = array<i64: 1, 128>}, {pipeline_mode = #tpu.pipeline_mode<synchronous>, transform_indices = @transform_5, window_bounds = array<i64: 128, 8>}, {pipeline_mode = #tpu.pipeline_mode<synchronous>, transform_indices = @transform_6, window_bounds = array<i64: 1, 8>}, {transform_indices = @transform_7, window_bounds = array<i64: 8, 8>}]} {
    %c0 = arith.constant 0 : index
    %c0_0 = arith.constant 0 : index
    %0 = vector.load %arg1[%c0, %c0_0] : memref<8x32xf32, #tpu.memory_space<vmem>>, vector<8x32xf32>
    %c0_1 = arith.constant 0 : index
    %c0_2 = arith.constant 0 : index
    %1 = vector.load %arg2[%c0_1, %c0_2] : memref<32x128xf32, #tpu.memory_space<vmem>>, vector<32x128xf32>
    %cst = arith.constant dense<0.000000e+00> : vector<8x128xf32>
    %2 = tpu.matmul %0, %1, %cst {dimension_numbers = #tpu.dot_dimension_numbers<[1], [0], [0], [1], [0, 0, 1, 1], [], []>} : vector<8x32xf32>, vector<32x128xf32>, vector<8x128xf32> -> vector<8x128xf32>
    %c0_3 = arith.constant 0 : index
    %c0_4 = arith.constant 0 : index
    %3 = vector.load %arg3[%c0_3, %c0_4] : memref<1x128xf32, #tpu.memory_space<vmem>>, vector<1x128xf32>
    %4 = vector.broadcast %3 : vector<1x128xf32> to vector<8x128xf32>
    %5 = arith.addf %2, %4 : vector<8x128xf32>
    %6 = math.tanh %5 : vector<8x128xf32>
    %c0_5 = arith.constant 0 : index
    %c0_6 = arith.constant 0 : index
    %7 = vector.load %arg4[%c0_5, %c0_6] : memref<128x128xf32, #tpu.memory_space<vmem>>, vector<128x128xf32>
    %cst_7 = arith.constant dense<0.000000e+00> : vector<8x128xf32>
    %8 = tpu.matmul %6, %7, %cst_7 {dimension_numbers = #tpu.dot_dimension_numbers<[1], [0], [0], [1], [0, 0, 1, 1], [], []>} : vector<8x128xf32>, vector<128x128xf32>, vector<8x128xf32> -> vector<8x128xf32>
    %c0_8 = arith.constant 0 : index
    %c0_9 = arith.constant 0 : index
    %9 = vector.load %arg5[%c0_8, %c0_9] : memref<1x128xf32, #tpu.memory_space<vmem>>, vector<1x128xf32>
    %10 = vector.broadcast %9 : vector<1x128xf32> to vector<8x128xf32>
    %11 = arith.addf %8, %10 : vector<8x128xf32>
    %12 = math.tanh %11 : vector<8x128xf32>
    %c0_10 = arith.constant 0 : index
    %c0_11 = arith.constant 0 : index
    %13 = vector.load %arg6[%c0_10, %c0_11] : memref<128x8xf32, #tpu.memory_space<vmem>>, vector<128x8xf32>
    %cst_12 = arith.constant dense<0.000000e+00> : vector<8x8xf32>
    %14 = tpu.matmul %12, %13, %cst_12 {dimension_numbers = #tpu.dot_dimension_numbers<[1], [0], [0], [1], [0, 0, 1, 1], [], []>} : vector<8x128xf32>, vector<128x8xf32>, vector<8x8xf32> -> vector<8x8xf32>
    %c0_13 = arith.constant 0 : index
    %c0_14 = arith.constant 0 : index
    %15 = vector.load %arg7[%c0_13, %c0_14] : memref<1x8xf32, #tpu.memory_space<vmem>>, vector<1x8xf32>
    %16 = vector.broadcast %15 : vector<1x8xf32> to vector<8x8xf32>
    %17 = arith.addf %14, %16 : vector<8x8xf32>
    %c0_15 = arith.constant 0 : index
    %c0_16 = arith.constant 0 : index
    %18 = vector.load %arg8[%c0_15, %c0_16] : memref<8x8xf32, #tpu.memory_space<vmem>>, vector<8x8xf32>
    tpu.vector_store %arg8[%c0_15, %c0_16], %17 {strides = array<i32>} : memref<8x8xf32, #tpu.memory_space<vmem>>, vector<8x8xf32>,
    return
  }
  func.func @transform_0(%arg0: i32) -> (i32, i32) {
    %c0_i32 = arith.constant 0 : i32
    %c0_i32_0 = arith.constant 0 : i32
    return %arg0, %c0_i32 : i32, i32
  }
  func.func @transform_1(%arg0: i32) -> (i32, i32) {
    %c0_i32 = arith.constant 0 : i32
    %c0_i32_0 = arith.constant 0 : i32
    %c0_i32_1 = arith.constant 0 : i32
    return %c0_i32, %c0_i32_0 : i32, i32
  }
  func.func @transform_2(%arg0: i32) -> (i32, i32) {
    %c0_i32 = arith.constant 0 : i32
    %c0_i32_0 = arith.constant 0 : i32
    %c0_i32_1 = arith.constant 0 : i32
    return %c0_i32, %c0_i32_0 : i32, i32
  }
  func.func @transform_3(%arg0: i32) -> (i32, i32) {
    %c0_i32 = arith.constant 0 : i32
    %c0_i32_0 = arith.constant 0 : i32
    %c0_i32_1 = arith.constant 0 : i32
    return %c0_i32, %c0_i32_0 : i32, i32
  }
  func.func @transform_4(%arg0: i32) -> (i32, i32) {
    %c0_i32 = arith.constant 0 : i32
    %c0_i32_0 = arith.constant 0 : i32
    %c0_i32_1 = arith.constant 0 : i32
    return %c0_i32, %c0_i32_0 : i32, i32
  }
  func.func @transform_5(%arg0: i32) -> (i32, i32) {
    %c0_i32 = arith.constant 0 : i32
    %c0_i32_0 = arith.constant 0 : i32
    %c0_i32_1 = arith.constant 0 : i32
    return %c0_i32, %c0_i32_0 : i32, i32
  }
  func.func @transform_6(%arg0: i32) -> (i32, i32) {
    %c0_i32 = arith.constant 0 : i32
    %c0_i32_0 = arith.constant 0 : i32
    %c0_i32_1 = arith.constant 0 : i32
    return %c0_i32, %c0_i32_0 : i32, i32
  }
  func.func @transform_7(%arg0: i32) -> (i32, i32) {
    %c0_i32 = arith.constant 0 : i32
    %c0_i32_0 = arith.constant 0 : i32
    return %arg0, %c0_i32 : i32, i32
  }
}

</mosaic_0001>

<bundles_post_ra>
// kernel: actor_forward.1
= control target key start
LH: loop header
LB: loop body
LE: loop exit
PB: predicated region body
PF: predicated region fallthrough
CT: control target
= control target key end

     0   :  { %12 = vsyncpa [#allocation3], 0  ;;  %s399_s0 = inlined_call_operand.vmem [shape: f32[8,32], index: 0, kind: input, shape index: {}]   ;;  %s400_s1 = inlined_call_operand.hbm [shape: f32[32,128], index: 1, kind: input, shape index: {}]   ;;  %s401_s2 = inlined_call_operand.vmem [shape: f32[1,128], index: 2, kind: input, shape index: {}]   ;;  %s402_s3 = inlined_call_operand.vmem [shape: f32[128,128], index: 3, kind: input, shape index: {}]   ;;  %s403_s4 = inlined_call_operand.vmem [shape: f32[1,128], index: 4, kind: input, shape index: {}]   ;;  %s404_s5 = inlined_call_operand.vmem [shape: f32[128,8], index: 5, kind: input, shape index: {}]   ;;  %s405_s6 = inlined_call_operand.vmem [shape: f32[1,8], index: 6, kind: input, shape index: {}]   ;;  %s406_s7 = inlined_call_operand.hbm [shape: f32[8,8], index: 7, kind: output, shape index: {}]  }
   0x1   :  { %13 = vsyncpa [#allocation4], 0  ;;  %s20_s26 = sshll.u32 %s400_s1, 4  ;;  %s241_s27 = smov [#allocation2]   ;;  %s21_s26 = int_to_ptr.hbm [resolvable:$true] %s20_s26 }
   0x2   :  { %s22_s28 = sshll.u32 %s241_s27, 4  ;;  %s242_s29 = smov 128   ;;  %s23_s28 = int_to_ptr.vmem [resolvable:$true] %s22_s28 }
   0x3   :  { %s243_s30 = smov 8  }
   0x4   :  { %28 = dma.hbm_to_vmem [thread:$0]  %s21_s26, 512, %s23_s28, [#allocation3], %s242_s29, %s242_s29, %s243_s30  }
   0x5   :  { %237 = dma.done.wait [#allocation3], 512  }
   0x6   :  { %238 = vsyncadd [#allocation3], 4294966784  ;;  %v47_v0 = vld [vmem:[#allocation2 + $0x18] sm:$0xff]  ;;  %v46_v1 = vld [vmem:[#allocation2 + $0x10] sm:$0xff]  ;;  %vm52_vm0 = vcmask 261120   ;;  %s244_s25 = smov [#allocation5]  }
   0x7   :  { %68 = vmatpush.msra.mxu0 %v47_v0  ;;  %v92_v2 = vld [vmem:[%s402_s3 + $0x78] sm:$0xff]  ;;  %v45_v3 = vld [vmem:[#allocation2 + $0x8] sm:$0xff]  ;;  %v91_v4 = vld [vmem:[%s402_s3 + $0x70] sm:$0xff]  ;;  %s165_s26 = sshll.u32 %s244_s25, 4  ;;  %vm158_vm1 = vcmask 64512   ;;  %s166_s26 = int_to_ptr.vmem [resolvable:$true] %s165_s26 }
   0x8   :  { %97 = vmatpush.msra.mxu1 %v92_v2  ;;  %v90_v5 = vld [vmem:[%s402_s3 + $0x68] sm:$0xff]  ;;  %v44_v6 = vld [vmem:[#allocation2] sm:$0xff]  ;;  %v88_v9 = vld [vmem:[%s402_s3 + $0x58] sm:$0xff] }
   0x9   :  { %69 = vmatpush.msra.mxu0 %v46_v1  ;;  %v43_v7 = vld [vmem:[%s399_s0] sm:$0xff]  ;;  %v87_v10 = vld [vmem:[%s402_s3 + $0x50] sm:$0xff]  ;;  %v86_v11 = vld [vmem:[%s402_s3 + $0x48] sm:$0xff] }
   0xa   :  { %98 = vmatpush.msra.mxu1 %v91_v4  ;;  %v89_v8 = vld [vmem:[%s402_s3 + $0x60] sm:$0xff]  ;;  %v84_v13 = vld [vmem:[%s402_s3 + $0x38] sm:$0xff]  ;;  %v83_v14 = vld [vmem:[%s402_s3 + $0x30] sm:$0xff] }
   0xb   :  { %70 = vmatpush.msra.mxu0 %v45_v3  ;;  %v85_v12 = vld [vmem:[%s402_s3 + $0x40] sm:$0xff]  ;;  %v82_v15 = vld [vmem:[%s402_s3 + $0x28] sm:$0xff]  ;;  %v80_v17 = vld [vmem:[%s402_s3 + $0x18] sm:$0xff] }
   0xc   :  { %99 = vmatpush.msra.mxu1 %v90_v5  ;;  %v81_v16 = vld [vmem:[%s402_s3 + $0x20] sm:$0xff]  ;;  %v79_v18 = vld [vmem:[%s402_s3 + $0x10] sm:$0xff]  ;;  %v78_v19 = vld [vmem:[%s402_s3 + $0x8] sm:$0xff] }
   0xd   :  { %71 = vmatpush.msra.mxu0 %v44_v6  ;;  %v77_v20 = vld [vmem:[%s402_s3] sm:$0xff]  ;;  %v133_v21 = vld [vmem:[%s404_s5 + $0x78] sm:$0xff]  ;;  %v132_v22 = vld [vmem:[%s404_s5 + $0x70] sm:$0xff] }
   0xe   :  { %177 = vmatmul.msk.f32.vlgmr.msra.gmra.mxu0 %vm52_vm0, %v43_v7  ;;  %100 = vmatpush.msra.mxu1 %v89_v8  ;;  %v131_v23 = vld [vmem:[%s404_s5 + $0x68] sm:$0xff]  ;;  %v130_v24 = vld [vmem:[%s404_s5 + $0x60] sm:$0xff]  ;;  %v129_v25 = vld [vmem:[%s404_s5 + $0x58] sm:$0xff] }
   0xf   :  { %138 = vmatpush.msra.mxu2 %v133_v21  ;;  %v128_v26 = vld [vmem:[%s404_s5 + $0x50] sm:$0xff]  ;;  %v127_v27 = vld [vmem:[%s404_s5 + $0x48] sm:$0xff]  ;;  %v126_v28 = vld [vmem:[%s404_s5 + $0x40] sm:$0xff] }
  0x10   :  { %101 = vmatpush.msra.mxu1 %v88_v9  ;;  %v125_v29 = vld [vmem:[%s404_s5 + $0x38] sm:$0xff]  ;;  %v124_v30 = vld [vmem:[%s404_s5 + $0x30] sm:$0xff]  ;;  %v123_v31 = vld [vmem:[%s404_s5 + $0x28] sm:$0xff] }
  0x11   :  { %139 = vmatpush.msra.mxu2 %v132_v22  ;;  %v182_v32 = vld [vmem:[%s401_s2] ss:$0 sm:$0xff]  ;;  %v121_v37 = vld [vmem:[%s404_s5 + $0x18] sm:$0xff]  ;;  %v120_v38 = vld [vmem:[%s404_s5 + $0x10] sm:$0xff] }
  0x12   :  { %102 = vmatpush.msra.mxu1 %v87_v10  ;;  %v122_v36 = vld [vmem:[%s404_s5 + $0x20] sm:$0xff]  ;;  %v119_v39 = vld [vmem:[%s404_s5 + $0x8] sm:$0xff] }
  0x13   :  { %140 = vmatpush.msra.mxu2 %v131_v23  ;;  %v118_v40 = vld [vmem:[%s404_s5] sm:$0xff]  ;;  %s167_s5 = sshll.u32 %s406_s7, 4  ;;  %s168_s5 = int_to_ptr.hbm [resolvable:$true] %s167_s5 }
  0x14   :  { %103 = vmatpush.msra.mxu1 %v86_v11  ;;  %v183_v41 = vld [vmem:[%s403_s4] ss:$0 sm:$0xff] }
  0x15   :  { %141 = vmatpush.msra.mxu2 %v130_v24  ;;  %v184_v45 = vld [vmem:[%s405_s6] ss:$0 sm:$0xff] }
  0x16   :  { %104 = vmatpush.msra.mxu1 %v85_v12 }
  0x17   :  { %142 = vmatpush.msra.mxu2 %v129_v25 }
  0x18   :  { %105 = vmatpush.msra.mxu1 %v84_v13 }
  0x19   :  { %143 = vmatpush.msra.mxu2 %v128_v26 }
  0x1a   :  { %106 = vmatpush.msra.mxu1 %v83_v14 }
  0x1b   :  { %144 = vmatpush.msra.mxu2 %v127_v27 }
  0x1c   :  { %107 = vmatpush.msra.mxu1 %v82_v15 }
  0x1d   :  { %145 = vmatpush.msra.mxu2 %v126_v28 }
  0x1e   :  { %108 = vmatpush.msra.mxu1 %v81_v16 }
  0x1f   :  { %146 = vmatpush.msra.mxu2 %v125_v29 }
  0x20   :  { %109 = vmatpush.msra.mxu1 %v80_v17 }
  0x21   :  { %147 = vmatpush.msra.mxu2 %v124_v30 }
  0x22   :  { %110 = vmatpush.msra.mxu1 %v79_v18 }
  0x23   :  { %148 = vmatpush.msra.mxu2 %v123_v31 }
  0x24   :  { %111 = vmatpush.msra.mxu1 %v78_v19 }
  0x25   :  { %149 = vmatpush.msra.mxu2 %v122_v36 }
  0x26   :  { %112 = vmatpush.msra.mxu1 %v77_v20 }
  0x27   :  { %150 = vmatpush.msra.mxu2 %v121_v37 }
  0x29   :  { %151 = vmatpush.msra.mxu2 %v120_v38 }
  0x2b   :  { %152 = vmatpush.msra.mxu2 %v119_v39 }
  0x2d   :  { %153 = vmatpush.msra.mxu2 %v118_v40 }
  0x8b   :  { %v73_v33 = vpop.f32.mrf.mxu0 }
  0x8c   :  { %v74_v34 = vadd.f32 %v182_v32, %v73_v33 }
  0x8e   :  { %185 = vtanh.f32 %v74_v34 }
  0x94   :  { %v186_v35 = vpop.eup %185 }
  0x95   :  { %113 = vmatmul.f32.vlgmr.msra.gmra.mxu1 %v186_v35 }
 0x112   :  { %v114_v42 = vpop.f32.mrf.mxu1 }
 0x113   :  { %v115_v43 = vadd.f32 %v183_v41, %v114_v42 }
 0x115   :  { %187 = vtanh.f32 %v115_v43 }
 0x11b   :  { %v188_v44 = vpop.eup %187 }
 0x11c   :  { %154 = vmatmul.f32.vlgmr.msra.gmra.mxu2 %v188_v44 }
 0x19f   :  { %v155_v46 = vpop.f32.mrf.mxu2 }
 0x1a0   :  { %v156_v47 = vadd.f32 %v184_v45, %v155_v46 }
 0x1a2   :  { %159 = vst.msk [vmem:[#allocation5] sm:$0xff] %vm158_vm1, %v156_v47 }
 0x1a3   :  { %170 = dma.vmem_to_hbm [thread:$0]  %s166_s26, 128, %s168_s5, [#allocation4]  }
 0x1a4   :  { %239 = dma.done.wait [#allocation4], 128  }
 0x1a5   :  { %240 = vsyncadd [#allocation4], 4294967168 }
 0x1a6   :  { %175 = vsyncpa [#allocation3], 1 }
 0x1a7   :  { %176 = vsyncpa [#allocation4], 1 }

</bundles_post_ra>
